<compile_context>
chip_gen: v5e
topology: v5e:2x2
jax: 0.10.0
libtpu: 0.0.40
codegen_flags: <defaults>
</compile_context>

<pallas_src>
import functools

import jax
import jax.numpy as jnp
import numpy as np
from jax.experimental import pallas as pl
from jax.experimental.pallas import tpu as pltpu


# ---------------------------------------------------------------------------
# helpers
# ---------------------------------------------------------------------------

def _round_up(x, m):
    return (x + m - 1) // m * m


_TPU_VMEM_CAP = None


def _vmem_cap():
    global _TPU_VMEM_CAP
    if _TPU_VMEM_CAP is None:
        cap = 64 << 20
        try:
            info = pltpu.get_tpu_info()
            cap = int(getattr(info, "vmem_capacity_bytes", cap)) or cap
        except Exception:
            pass
        _TPU_VMEM_CAP = cap
    return _TPU_VMEM_CAP


def _vmem_limit():
    # ~3/4 of physical VMEM: 48 MiB on 64 MiB parts (v7x), 96 MiB on 128 MiB.
    return int(min(100 << 20, max(32 << 20, _vmem_cap() * 3 // 4)))


def _pick_tm(bytes_per_row, m, cap=1024):
    # M-axis tile: fill a VMEM budget scaled to the chip, multiple of 16 for
    # bf16 sublane packing, and keep at least 2 blocks when M allows so both
    # v7x TensorCores get work on the "parallel" axis.
    budget = max(6 << 20, _vmem_cap() // 10)
    tm = min(cap, max(16, budget // max(1, bytes_per_row)))
    tm = max(16, (tm // 16) * 16)
    tm = min(tm, _round_up(m, 16))
    if m >= 32 and _round_up(m, tm) // tm < 2:
        tm = max(16, _round_up((m + 1) // 2, 16))
    return tm


def _sigmoid(x):
    # exp + approx reciprocal both issue on the EUP slot (off the VPU path).
    return pl.reciprocal(1.0 + jnp.exp(-x), approx=True)


# ---------------------------------------------------------------------------
# Conv layer: fused "im2col-in-VMEM" matmul kernel, halos handled in-kernel
# ---------------------------------------------------------------------------

def _conv_kernel(x_ref, w_ref, b_ref, o_ref, *, kh, hin, hout, sh, ph, woc,
                 fold_k, fold_h):
    # x_ref : (hin, tm, wpc) bf16         unpadded input rows
    # w_ref : (kh*wpc, woc)  bf16  (fold_k)  or (kh, wpc, woc) bf16
    # b_ref : (1, woc) f32
    # o_ref : (tm, hout*woc) bf16 (fold_h)   or (hout, tm, woc) bf16
    bias = b_ref[...]
    if fold_k:
        w2 = w_ref[...]
    zero_row = None
    for ho in range(hout):
        if fold_k:
            pieces = []
            for di in range(kh):
                hi = ho * sh + di - ph
                if 0 <= hi < hin:
                    pieces.append(x_ref[hi])
                else:
                    if zero_row is None:
                        zero_row = jnp.zeros(
                            (x_ref.shape[1], x_ref.shape[2]), x_ref.dtype)
                    pieces.append(zero_row)
            lhs = pieces[0] if kh == 1 else jnp.concatenate(pieces, axis=-1)
            acc = jnp.dot(lhs, w2, preferred_element_type=jnp.float32)
        else:
            acc = None
            for di in range(kh):
                hi = ho * sh + di - ph
                if 0 <= hi < hin:
                    part = jnp.dot(x_ref[hi], w_ref[di],
                                   preferred_element_type=jnp.float32)
                    acc = part if acc is None else acc + part
            if acc is None:
                acc = jnp.zeros((x_ref.shape[1], woc), jnp.float32)
        y = jnp.maximum(acc + bias, 0.0).astype(o_ref.dtype)
        if fold_h:
            o_ref[:, ho * woc:(ho + 1) * woc] = y
        else:
            o_ref[ho] = y
    # TODO(synk): dropout with p=self._p is a no-op (p=0.0); not implemented.


def _conv_layer_call(x, layer, tm):
    hin, mp, wpc = x.shape
    kh, hout, woc = layer["kh"], layer["hout"], layer["woc"]
    fold_k, fold_h = layer["fold_k"], layer["fold_h"]

    if fold_h:
        out_shape = jax.ShapeDtypeStruct((mp, hout * woc), jnp.bfloat16)
        out_spec = pl.BlockSpec((tm, hout * woc), lambda i: (i, 0))
    else:
        out_shape = jax.ShapeDtypeStruct((hout, mp, woc), jnp.bfloat16)
        out_spec = pl.BlockSpec((hout, tm, woc), lambda i: (0, i, 0))
    if fold_k:
        w_spec = pl.BlockSpec((kh * wpc, woc), lambda i: (0, 0))
    else:
        w_spec = pl.BlockSpec((kh, wpc, woc), lambda i: (0, 0, 0))

    flops = 2 * mp * hout * kh * wpc * woc
    bytes_accessed = (x.size + layer["w"].size + mp * hout * woc) * 2 \
        + layer["b"].size * 4
    kern = functools.partial(
        _conv_kernel, kh=kh, hin=hin, hout=hout, sh=layer["sh"],
        ph=layer["ph"], woc=woc, fold_k=fold_k, fold_h=fold_h)
    return pl.pallas_call(
        kern,
        out_shape=out_shape,
        grid=(mp // tm,),
        in_specs=[
            pl.BlockSpec((hin, tm, wpc), lambda i: (0, i, 0)),
            w_spec,
            pl.BlockSpec((1, woc), lambda i: (0, 0)),
        ],
        out_specs=out_spec,
        compiler_params=pltpu.CompilerParams(
            dimension_semantics=("parallel",),
            vmem_limit_bytes=_vmem_limit()),
        cost_estimate=pl.CostEstimate(flops=int(flops), transcendentals=0,
                                      bytes_accessed=int(bytes_accessed)),
    )(x, layer["w"], layer["b"])


# ---------------------------------------------------------------------------
# LSTM: fused (input projection + chunked serial recurrence) kernel
# ---------------------------------------------------------------------------

def _lstm_fused_kernel(x_ref, wih_ref, whh_ref, b_ref, o_ref, h_scr, c_scr,
                       *, tc, hp, n):
    # x_ref  : (1, tc*n, din) bf16    time-chunk of the layer input (t-major)
    # wih_ref: (1, din, 4*hp) bf16    resident across the time axis
    # whh_ref: (1, hp, 4*hp)  bf16
    # b_ref  : (1, 1, 4*hp)   f32     (b_ih + b_hh, gate blocks 128-aligned)
    # o_ref  : (1, tc*n, hp)  bf16
    # h_scr, c_scr : (n, hp) f32 VMEM scratch carried across chunks
    @pl.when(pl.program_id(1) == 0)
    def _():
        h_scr[...] = jnp.zeros_like(h_scr)
        c_scr[...] = jnp.zeros_like(c_scr)

    # Chunk-wide input projection (never round-trips through HBM).
    gx = jnp.dot(x_ref[0], wih_ref[0],
                 preferred_element_type=jnp.float32) + b_ref[0]
    whh = whh_ref[0]
    h = h_scr[...]
    c = c_scr[...]
    for t in range(tc):                       # static unroll of serial steps
        gates = gx[t * n:(t + 1) * n] + jnp.dot(
            h.astype(jnp.bfloat16), whh, preferred_element_type=jnp.float32)
        # PyTorch gate order i, f, g, o; each gate block is hp (128k) wide.
        i = _sigmoid(gates[:, 0 * hp:1 * hp])
        f = _sigmoid(gates[:, 1 * hp:2 * hp])
        g = jnp.tanh(gates[:, 2 * hp:3 * hp])
        o = _sigmoid(gates[:, 3 * hp:4 * hp])
        c = f * c + i * g
        h = o * jnp.tanh(c)
        o_ref[0, t * n:(t + 1) * n] = h.astype(o_ref.dtype)
    h_scr[...] = h
    c_scr[...] = c


def _lstm_fused(x_flat, w_ih, w_hh, b, tc, hp, n):
    d, rows, din = x_flat.shape
    h4 = 4 * hp
    nt = rows // (tc * n)
    flops = 2 * d * rows * din * h4 + d * rows * (2 * hp * h4 + 12 * hp)
    bytes_accessed = (x_flat.size + w_ih.size + w_hh.size + d * rows * hp) * 2 \
        + b.size * 4
    return pl.pallas_call(
        functools.partial(_lstm_fused_kernel, tc=tc, hp=hp, n=n),
        out_shape=jax.ShapeDtypeStruct((d, rows, hp), jnp.bfloat16),
        grid=(d, nt),
        in_specs=[
            pl.BlockSpec((1, tc * n, din), lambda di, ti: (di, ti, 0)),
            pl.BlockSpec((1, din, h4), lambda di, ti: (di, 0, 0)),
            pl.BlockSpec((1, hp, h4), lambda di, ti: (di, 0, 0)),
            pl.BlockSpec((1, 1, h4), lambda di, ti: (di, 0, 0)),
        ],
        out_specs=pl.BlockSpec((1, tc * n, hp), lambda di, ti: (di, ti, 0)),
        scratch_shapes=[pltpu.VMEM((n, hp), jnp.float32),
                        pltpu.VMEM((n, hp), jnp.float32)],
        compiler_params=pltpu.CompilerParams(
            dimension_semantics=("parallel", "arbitrary"),
            vmem_limit_bytes=_vmem_limit()),
        cost_estimate=pl.CostEstimate(
            flops=int(flops),
            transcendentals=int(5 * d * rows * hp),
            bytes_accessed=int(bytes_accessed)),
    )(x_flat, w_ih, w_hh, b)


def _lstm_layer(h_tm, layer_w, rev_idx, hid, time_chunk=16):
    # h_tm: (T, N, Din) bf16 time-major layer input
    t, n, _ = h_tm.shape
    w_ih, w_hh, b = layer_w["w_ih"], layer_w["w_hh"], layer_w["b"]
    dirs = w_ih.shape[0]
    hp = w_hh.shape[1]

    if dirs == 2:
        # packed-seq backward direction == per-sequence length-reversed input
        h_rev = jnp.take_along_axis(h_tm, rev_idx[:, :, None], axis=0)
        x_dirs = jnp.stack([h_tm, h_rev], axis=0)
    else:
        x_dirs = h_tm[None]

    tc = min(time_chunk, _round_up(t, 8))
    tp = _round_up(t, tc)
    x_dirs = jnp.pad(x_dirs, ((0, 0), (0, tp - t), (0, 0), (0, 0)))
    x_flat = x_dirs.reshape(dirs, tp * n, -1).astype(jnp.bfloat16)

    out = _lstm_fused(x_flat, w_ih, w_hh, b, tc, hp, n)   # (dirs, tp*n, hp)
    out = out.reshape(dirs, tp, n, hp)[:, :t, :, :hid]    # padded tail + pad
                                                          # lanes are inert
    if dirs == 2:
        bwd = jnp.take_along_axis(out[1], rev_idx[:, :, None], axis=0)
        return jnp.concatenate([out[0], bwd], axis=-1)
    return out[0]


# ---------------------------------------------------------------------------
# Parameter construction (mirrors Frontend.__init__), deterministic init
# ---------------------------------------------------------------------------

def build_frontend(params, input_size, key):
    kx = params["convolutional_kernel_time"]
    ky = params["convolutional_kernel_freq"]
    x = params["window_size"]
    y = input_size
    ci = 1
    co = params["convolutional_initial_channels"]
    up_c = params["convolutional_channel_factor"]
    on_sy = params["convolutional_freq_factor"]
    on_sx = params["convolutional_time_factor"]
    px, py = (kx - 1) // 2, (ky - 1) // 2

    conv_layers = []
    lanes_in = y * ci
    n_conv = params["convolutional_layers"]
    for layer_no in range(1, n_conv + 1):
        if layer_no % params["convolutional_factor_schedule"]:
            sx = sy = 1
        else:
            sx, sy, co = on_sx, on_sy, up_c * co
        px_ = px if (x + 2 * px - kx) // sx + 1 > 0 else px + 1
        py_ = py if (y + 2 * py - ky) // sy + 1 > 0 else py + 1

        key, kw_, kb_ = jax.random.split(key, 3)
        fan_in = ci * kx * ky
        bound = 1.0 / (fan_in ** 0.5)
        wgt = jax.random.uniform(kw_, (co, ci, kx, ky), jnp.float32,
                                 -bound, bound)
        bias = jax.random.uniform(kb_, (co,), jnp.float32, -bound, bound)

        hin, win = x, y
        hout = (hin + 2 * px_ - kx) // sx + 1
        wout = (win + 2 * py_ - ky) // sy + 1
        woc = _round_up(wout * co, 128)        # lane-dense output width

        # Freq-lowered weight: freq kernel, freq stride AND freq zero-padding
        # are folded into a block-banded (lanes_in, woc) matrix per time tap;
        # out-of-range freq taps simply contribute zero rows, so no freq halo
        # padding of the activations is ever needed.
        w_np = np.asarray(wgt)                 # (Cout, Cin, kx, ky)
        w_low = np.zeros((kx, lanes_in, woc), np.float32)
        for di in range(kx):
            for wo in range(wout):
                for dj in range(ky):
                    wi = wo * sy + dj - py_
                    if 0 <= wi < win:
                        w_low[di, wi * ci:(wi + 1) * ci,
                              wo * co:(wo + 1) * co] = w_np[:, :, di, dj].T
        b_low = np.zeros((1, woc), np.float32)
        b_low[0, :wout * co] = np.tile(np.asarray(bias), wout)

        fold_k = (lanes_in * kx) <= 2048       # fold time taps only if K small
        is_last = layer_no == n_conv
        w_arr = w_low.reshape(kx * lanes_in, woc) if fold_k else w_low

        conv_layers.append(dict(
            w=jnp.asarray(w_arr, jnp.bfloat16),
            b=jnp.asarray(b_low, jnp.float32),
            kh=kx, hin=hin, hout=hout, sh=sx, ph=px_,
            lanes_in=lanes_in, woc=woc, fold_k=fold_k, fold_h=is_last,
            bytes_per_row=(hin * lanes_in + hout * woc
                           + (kx * lanes_in if fold_k else 0)) * 2,
        ))
        y = wout
        x = hout
        ci = co
        lanes_in = woc
    assert x > 0 and y > 0

    hid = params["recurrent_size"]
    hp = _round_up(hid, 128)                   # lane-aligned gate blocks
    num_dirs = 2 if params["recurrent_bidirectional"] else 1
    if n_conv:
        feat_dim = conv_layers[-1]["hout"] * conv_layers[-1]["woc"]
    else:
        feat_dim = params["window_size"] * input_size

    lstm_weights = []
    din = feat_dim
    for _layer in range(params["recurrent_layers"]):
        w_ih_l, w_hh_l, b_l = [], [], []
        bnd = 1.0 / (hid ** 0.5)
        for _d in range(num_dirs):
            key, k1, k2, k3, k4 = jax.random.split(key, 5)
            w_ih = np.asarray(jax.random.uniform(k1, (din, 4 * hid),
                                                 jnp.float32, -bnd, bnd))
            w_hh = np.asarray(jax.random.uniform(k2, (hid, 4 * hid),
                                                 jnp.float32, -bnd, bnd))
            b_ih = np.asarray(jax.random.uniform(k3, (4 * hid,),
                                                 jnp.float32, -bnd, bnd))
            b_hh = np.asarray(jax.random.uniform(k4, (4 * hid,),
                                                 jnp.float32, -bnd, bnd))
            bb = b_ih + b_hh                   # matches PyTorch b_ih + b_hh
            # Place each i/f/g/o block at a 128-aligned lane offset; padded
            # gate columns are zero so the padded h/c columns stay exactly 0.
            w_ih_p = np.zeros((din, 4 * hp), np.float32)
            w_hh_p = np.zeros((hp, 4 * hp), np.float32)
            b_p = np.zeros((4 * hp,), np.float32)
            for g in range(4):
                w_ih_p[:, g * hp:g * hp + hid] = w_ih[:, g * hid:(g + 1) * hid]
                w_hh_p[:hid, g * hp:g * hp + hid] = w_hh[:, g * hid:(g + 1) * hid]
                b_p[g * hp:g * hp + hid] = bb[g * hid:(g + 1) * hid]
            w_ih_l.append(w_ih_p)
            w_hh_l.append(w_hh_p)
            b_l.append(b_p)
        lstm_weights.append(dict(
            w_ih=jnp.asarray(np.stack(w_ih_l), jnp.bfloat16),  # (dirs, Din, 4Hp)
            w_hh=jnp.asarray(np.stack(w_hh_l), jnp.bfloat16),  # (dirs, Hp, 4Hp)
            b=jnp.asarray(np.stack(b_l), jnp.float32)[:, None, :],
        ))
        din = hid * num_dirs
    output_size = (hid * num_dirs) if params["recurrent_layers"] else feat_dim
    return conv_layers, lstm_weights, output_size


# ---------------------------------------------------------------------------
# Forward pass
# ---------------------------------------------------------------------------

def frontend_forward(x, lens, params, conv_layers, lstm_weights):
    # x: (N, T, F) float32 ; lens: (N,) int32
    n, t, f = x.shape
    w = params["window_size"]
    s = params["window_stride"]

    # masked_fill(len_mask, 0)
    t_idx = jnp.arange(t)
    x = jnp.where((t_idx[None, :] < lens[:, None])[:, :, None], x, 0.0)

    # pad + unfold along time; windows are kept "window-row major",
    # channels-last, and M = Tw*N is ordered time-major so the time-major
    # LSTM input falls out of a plain reshape after the last conv layer.
    if w > 1:
        x = jnp.pad(x, ((0, 0), (0, w - 1), (0, 0)))
    tpad = x.shape[1]
    tw = (tpad - w) // s + 1
    lens_ = (lens - 1) // s + 1

    widx = jnp.arange(w)[:, None] + jnp.arange(tw)[None, :] * s   # (W, Tw)
    wins = x[:, widx, :]                                          # (N, W, Tw, F)
    wins = jnp.transpose(wins, (1, 2, 0, 3)).reshape(w, tw * n, f)

    m = tw * n
    if conv_layers:
        tm = _pick_tm(max(l["bytes_per_row"] for l in conv_layers), m)
        mp = _round_up(m, tm)
        h = jnp.pad(wins.astype(jnp.bfloat16), ((0, 0), (0, mp - m), (0, 0)))
        for layer in conv_layers:
            h = _conv_layer_call(h, layer, tm)
        feats = h[:m]                                   # (M, Hl*Wl*Cl) bf16
    else:
        feats = jnp.transpose(wins, (1, 0, 2)).reshape(m, w * f)
    h_tm = feats.reshape(tw, n, -1)                     # time-major (Tw, N, D)

    tt = jnp.arange(tw)
    rev_idx = jnp.where(tt[:, None] < lens_[None, :],
                        lens_[None, :] - 1 - tt[:, None],
                        tt[:, None]).astype(jnp.int32)            # (Tw, N)

    hid = params["recurrent_size"]
    for layer_w in lstm_weights:
        h_tm = _lstm_layer(h_tm, layer_w, rev_idx, hid)

    # pad_packed_sequence zero-fills positions past each sequence length
    valid = tt[:, None] < lens_[None, :]
    out = jnp.where(valid[:, :, None], h_tm.astype(jnp.float32), 0.0)
    return out, lens_


# ---------------------------------------------------------------------------

if __name__ == "__main__":
    params = dict(
        window_size=5, window_stride=3,
        convolutional_kernel_time=3, convolutional_kernel_freq=3,
        convolutional_initial_channels=8, convolutional_layers=3,
        convolutional_time_factor=2, convolutional_freq_factor=1,
        convolutional_channel_factor=1, convolutional_factor_schedule=2,
        recurrent_size=32, recurrent_layers=2, recurrent_bidirectional=True,
    )
    N, T, F = 2, 8, 16
    key = jax.random.PRNGKey(0)
    key, kx_ = jax.random.split(key)
    x = jax.random.normal(kx_, (N, T, F), jnp.float32)
    lens = jnp.array([8, 5], dtype=jnp.int32)

    conv_layers, lstm_weights, out_size = build_frontend(params, F, key)

    out, lens_ = frontend_forward(x, lens, params, conv_layers, lstm_weights)
    # pad_packed_sequence truncates the time dim to max(lens_)
    out = out[: int(jnp.max(lens_))]
    jax.block_until_ready(out)
    assert out.shape == (int(jnp.max(lens_)), N, out_size)
    print("KERNEL_OK")
</pallas_src>

<mosaic_0001>
module attributes {stable_mosaic.version = 11 : i64} {
  func.func @_conv_kernel(%arg0: i32, %arg1: memref<5x16x16xbf16, #tpu.memory_space<vmem>>, %arg2: memref<48x128xbf16, #tpu.memory_space<vmem>>, %arg3: memref<1x128xf32, #tpu.memory_space<vmem>>, %arg4: memref<5x16x128xbf16, #tpu.memory_space<vmem>>) attributes {dimension_semantics = [#tpu.dimension_semantics<parallel>], iteration_bounds = array<i64: 1>, scalar_prefetch = 0 : i64, scratch_operands = 0 : i64, tpu.core_type = #tpu.core_type<tc>, window_params = [{transform_indices = @transform_0, window_bounds = array<i64: 5, 16, 16>}, {pipeline_mode = #tpu.pipeline_mode<synchronous>, transform_indices = @transform_1, window_bounds = array<i64: 48, 128>}, {pipeline_mode = #tpu.pipeline_mode<synchronous>, transform_indices = @transform_2, window_bounds = array<i64: 1, 128>}, {transform_indices = @transform_3, window_bounds = array<i64: 5, 16, 128>}]} {
    %c0 = arith.constant 0 : index
    %c0_0 = arith.constant 0 : index
    %0 = vector.load %arg3[%c0, %c0_0] : memref<1x128xf32, #tpu.memory_space<vmem>>, vector<1x128xf32>
    %c0_1 = arith.constant 0 : index
    %c0_2 = arith.constant 0 : index
    %1 = vector.load %arg2[%c0_1, %c0_2] : memref<48x128xbf16, #tpu.memory_space<vmem>>, vector<48x128xbf16>
    %cst = arith.constant 0.000000e+00 : bf16
    %2 = vector.broadcast %cst : bf16 to vector<16x16xbf16>
    %c0_3 = arith.constant 0 : index
    %c0_4 = arith.constant 0 : index
    %c0_5 = arith.constant 0 : index
    %3 = vector.load %arg1[%c0_3, %c0_4, %c0_5] : memref<5x16x16xbf16, #tpu.memory_space<vmem>>, vector<1x16x16xbf16>
    %4 = vector.shape_cast %3 : vector<1x16x16xbf16> to vector<16x16xbf16>
    %c1 = arith.constant 1 : index
    %c0_6 = arith.constant 0 : index
    %c0_7 = arith.constant 0 : index
    %5 = vector.load %arg1[%c1, %c0_6, %c0_7] : memref<5x16x16xbf16, #tpu.memory_space<vmem>>, vector<1x16x16xbf16>
    %6 = vector.shape_cast %5 : vector<1x16x16xbf16> to vector<16x16xbf16>
    %7 = tpu.concatenate %2, %4, %6 in 1 : vector<16x16xbf16>, vector<16x16xbf16>, vector<16x16xbf16> -> vector<16x48xbf16>
    %cst_8 = arith.constant dense<0.000000e+00> : vector<16x128xf32>
    %8 = tpu.matmul %7, %1, %cst_8 {dimension_numbers = #tpu.dot_dimension_numbers<[1], [0], [0], [1], [0, 0, 1, 1], [], []>} : vector<16x48xbf16>, vector<48x128xbf16>, vector<16x128xf32> -> vector<16x128xf32>
    %9 = vector.broadcast %0 : vector<1x128xf32> to vector<16x128xf32>
    %10 = arith.addf %8, %9 : vector<16x128xf32>
    %cst_9 = arith.constant 0.000000e+00 : f32
    %11 = vector.broadcast %cst_9 : f32 to vector<16x128xf32>
    %12 = arith.maximumf %10, %11 : vector<16x128xf32>
    %13 = arith.truncf %12 : vector<16x128xf32> to vector<16x128xbf16>
    %c0_10 = arith.constant 0 : index
    %c0_11 = arith.constant 0 : index
    %c0_12 = arith.constant 0 : index
    %14 = vector.load %arg4[%c0_10, %c0_11, %c0_12] : memref<5x16x128xbf16, #tpu.memory_space<vmem>>, vector<1x16x128xbf16>
    %15 = vector.shape_cast %14 : vector<1x16x128xbf16> to vector<16x128xbf16>
    %16 = vector.shape_cast %13 : vector<16x128xbf16> to vector<1x16x128xbf16>
    tpu.vector_store %arg4[%c0_10, %c0_11, %c0_12], %16 {strides = array<i32>} : memref<5x16x128xbf16, #tpu.memory_space<vmem>>, vector<1x16x128xbf16>,
    %c0_13 = arith.constant 0 : index
    %c0_14 = arith.constant 0 : index
    %c0_15 = arith.constant 0 : index
    %17 = vector.load %arg1[%c0_13, %c0_14, %c0_15] : memref<5x16x16xbf16, #tpu.memory_space<vmem>>, vector<1x16x16xbf16>
    %18 = vector.shape_cast %17 : vector<1x16x16xbf16> to vector<16x16xbf16>
    %c1_16 = arith.constant 1 : index
    %c0_17 = arith.constant 0 : index
    %c0_18 = arith.constant 0 : index
    %19 = vector.load %arg1[%c1_16, %c0_17, %c0_18] : memref<5x16x16xbf16, #tpu.memory_space<vmem>>, vector<1x16x16xbf16>
    %20 = vector.shape_cast %19 : vector<1x16x16xbf16> to vector<16x16xbf16>
    %c2 = arith.constant 2 : index
    %c0_19 = arith.constant 0 : index
    %c0_20 = arith.constant 0 : index
    %21 = vector.load %arg1[%c2, %c0_19, %c0_20] : memref<5x16x16xbf16, #tpu.memory_space<vmem>>, vector<1x16x16xbf16>
    %22 = vector.shape_cast %21 : vector<1x16x16xbf16> to vector<16x16xbf16>
    %23 = tpu.concatenate %18, %20, %22 in 1 : vector<16x16xbf16>, vector<16x16xbf16>, vector<16x16xbf16> -> vector<16x48xbf16>
    %cst_21 = arith.constant dense<0.000000e+00> : vector<16x128xf32>
    %24 = tpu.matmul %23, %1, %cst_21 {dimension_numbers = #tpu.dot_dimension_numbers<[1], [0], [0], [1], [0, 0, 1, 1], [], []>} : vector<16x48xbf16>, vector<48x128xbf16>, vector<16x128xf32> -> vector<16x128xf32>
    %25 = vector.broadcast %0 : vector<1x128xf32> to vector<16x128xf32>
    %26 = arith.addf %24, %25 : vector<16x128xf32>
    %cst_22 = arith.constant 0.000000e+00 : f32
    %27 = vector.broadcast %cst_22 : f32 to vector<16x128xf32>
    %28 = arith.maximumf %26, %27 : vector<16x128xf32>
    %29 = arith.truncf %28 : vector<16x128xf32> to vector<16x128xbf16>
    %c1_23 = arith.constant 1 : index
    %c0_24 = arith.constant 0 : index
    %c0_25 = arith.constant 0 : index
    %30 = vector.load %arg4[%c1_23, %c0_24, %c0_25] : memref<5x16x128xbf16, #tpu.memory_space<vmem>>, vector<1x16x128xbf16>
    %31 = vector.shape_cast %30 : vector<1x16x128xbf16> to vector<16x128xbf16>
    %32 = vector.shape_cast %29 : vector<16x128xbf16> to vector<1x16x128xbf16>
    tpu.vector_store %arg4[%c1_23, %c0_24, %c0_25], %32 {strides = array<i32>} : memref<5x16x128xbf16, #tpu.memory_space<vmem>>, vector<1x16x128xbf16>,
    %c1_26 = arith.constant 1 : index
    %c0_27 = arith.constant 0 : index
    %c0_28 = arith.constant 0 : index
    %33 = vector.load %arg1[%c1_26, %c0_27, %c0_28] : memref<5x16x16xbf16, #tpu.memory_space<vmem>>, vector<1x16x16xbf16>
    %34 = vector.shape_cast %33 : vector<1x16x16xbf16> to vector<16x16xbf16>
    %c2_29 = arith.constant 2 : index
    %c0_30 = arith.constant 0 : index
    %c0_31 = arith.constant 0 : index
    %35 = vector.load %arg1[%c2_29, %c0_30, %c0_31] : memref<5x16x16xbf16, #tpu.memory_space<vmem>>, vector<1x16x16xbf16>
    %36 = vector.shape_cast %35 : vector<1x16x16xbf16> to vector<16x16xbf16>
    %c3 = arith.constant 3 : index
    %c0_32 = arith.constant 0 : index
    %c0_33 = arith.constant 0 : index
    %37 = vector.load %arg1[%c3, %c0_32, %c0_33] : memref<5x16x16xbf16, #tpu.memory_space<vmem>>, vector<1x16x16xbf16>
    %38 = vector.shape_cast %37 : vector<1x16x16xbf16> to vector<16x16xbf16>
    %39 = tpu.concatenate %34, %36, %38 in 1 : vector<16x16xbf16>, vector<16x16xbf16>, vector<16x16xbf16> -> vector<16x48xbf16>
    %cst_34 = arith.constant dense<0.000000e+00> : vector<16x128xf32>
    %40 = tpu.matmul %39, %1, %cst_34 {dimension_numbers = #tpu.dot_dimension_numbers<[1], [0], [0], [1], [0, 0, 1, 1], [], []>} : vector<16x48xbf16>, vector<48x128xbf16>, vector<16x128xf32> -> vector<16x128xf32>
    %41 = vector.broadcast %0 : vector<1x128xf32> to vector<16x128xf32>
    %42 = arith.addf %40, %41 : vector<16x128xf32>
    %cst_35 = arith.constant 0.000000e+00 : f32
    %43 = vector.broadcast %cst_35 : f32 to vector<16x128xf32>
    %44 = arith.maximumf %42, %43 : vector<16x128xf32>
    %45 = arith.truncf %44 : vector<16x128xf32> to vector<16x128xbf16>
    %c2_36 = arith.constant 2 : index
    %c0_37 = arith.constant 0 : index
    %c0_38 = arith.constant 0 : index
    %46 = vector.load %arg4[%c2_36, %c0_37, %c0_38] : memref<5x16x128xbf16, #tpu.memory_space<vmem>>, vector<1x16x128xbf16>
    %47 = vector.shape_cast %46 : vector<1x16x128xbf16> to vector<16x128xbf16>
    %48 = vector.shape_cast %45 : vector<16x128xbf16> to vector<1x16x128xbf16>
    tpu.vector_store %arg4[%c2_36, %c0_37, %c0_38], %48 {strides = array<i32>} : memref<5x16x128xbf16, #tpu.memory_space<vmem>>, vector<1x16x128xbf16>,
    %c2_39 = arith.constant 2 : index
    %c0_40 = arith.constant 0 : index
    %c0_41 = arith.constant 0 : index
    %49 = vector.load %arg1[%c2_39, %c0_40, %c0_41] : memref<5x16x16xbf16, #tpu.memory_space<vmem>>, vector<1x16x16xbf16>
    %50 = vector.shape_cast %49 : vector<1x16x16xbf16> to vector<16x16xbf16>
    %c3_42 = arith.constant 3 : index
    %c0_43 = arith.constant 0 : index
    %c0_44 = arith.constant 0 : index
    %51 = vector.load %arg1[%c3_42, %c0_43, %c0_44] : memref<5x16x16xbf16, #tpu.memory_space<vmem>>, vector<1x16x16xbf16>
    %52 = vector.shape_cast %51 : vector<1x16x16xbf16> to vector<16x16xbf16>
    %c4 = arith.constant 4 : index
    %c0_45 = arith.constant 0 : index
    %c0_46 = arith.constant 0 : index
    %53 = vector.load %arg1[%c4, %c0_45, %c0_46] : memref<5x16x16xbf16, #tpu.memory_space<vmem>>, vector<1x16x16xbf16>
    %54 = vector.shape_cast %53 : vector<1x16x16xbf16> to vector<16x16xbf16>
    %55 = tpu.concatenate %50, %52, %54 in 1 : vector<16x16xbf16>, vector<16x16xbf16>, vector<16x16xbf16> -> vector<16x48xbf16>
    %cst_47 = arith.constant dense<0.000000e+00> : vector<16x128xf32>
    %56 = tpu.matmul %55, %1, %cst_47 {dimension_numbers = #tpu.dot_dimension_numbers<[1], [0], [0], [1], [0, 0, 1, 1], [], []>} : vector<16x48xbf16>, vector<48x128xbf16>, vector<16x128xf32> -> vector<16x128xf32>
    %57 = vector.broadcast %0 : vector<1x128xf32> to vector<16x128xf32>
    %58 = arith.addf %56, %57 : vector<16x128xf32>
    %cst_48 = arith.constant 0.000000e+00 : f32
    %59 = vector.broadcast %cst_48 : f32 to vector<16x128xf32>
    %60 = arith.maximumf %58, %59 : vector<16x128xf32>
    %61 = arith.truncf %60 : vector<16x128xf32> to vector<16x128xbf16>
    %c3_49 = arith.constant 3 : index
    %c0_50 = arith.constant 0 : index
    %c0_51 = arith.constant 0 : index
    %62 = vector.load %arg4[%c3_49, %c0_50, %c0_51] : memref<5x16x128xbf16, #tpu.memory_space<vmem>>, vector<1x16x128xbf16>
    %63 = vector.shape_cast %62 : vector<1x16x128xbf16> to vector<16x128xbf16>
    %64 = vector.shape_cast %61 : vector<16x128xbf16> to vector<1x16x128xbf16>
    tpu.vector_store %arg4[%c3_49, %c0_50, %c0_51], %64 {strides = array<i32>} : memref<5x16x128xbf16, #tpu.memory_space<vmem>>, vector<1x16x128xbf16>,
    %c3_52 = arith.constant 3 : index
    %c0_53 = arith.constant 0 : index
    %c0_54 = arith.constant 0 : index
    %65 = vector.load %arg1[%c3_52, %c0_53, %c0_54] : memref<5x16x16xbf16, #tpu.memory_space<vmem>>, vector<1x16x16xbf16>
    %66 = vector.shape_cast %65 : vector<1x16x16xbf16> to vector<16x16xbf16>
    %c4_55 = arith.constant 4 : index
    %c0_56 = arith.constant 0 : index
    %c0_57 = arith.constant 0 : index
    %67 = vector.load %arg1[%c4_55, %c0_56, %c0_57] : memref<5x16x16xbf16, #tpu.memory_space<vmem>>, vector<1x16x16xbf16>
    %68 = vector.shape_cast %67 : vector<1x16x16xbf16> to vector<16x16xbf16>
    %69 = tpu.concatenate %66, %68, %2 in 1 : vector<16x16xbf16>, vector<16x16xbf16>, vector<16x16xbf16> -> vector<16x48xbf16>
    %cst_58 = arith.constant dense<0.000000e+00> : vector<16x128xf32>
    %70 = tpu.matmul %69, %1, %cst_58 {dimension_numbers = #tpu.dot_dimension_numbers<[1], [0], [0], [1], [0, 0, 1, 1], [], []>} : vector<16x48xbf16>, vector<48x128xbf16>, vector<16x128xf32> -> vector<16x128xf32>
    %71 = vector.broadcast %0 : vector<1x128xf32> to vector<16x128xf32>
    %72 = arith.addf %70, %71 : vector<16x128xf32>
    %cst_59 = arith.constant 0.000000e+00 : f32
    %73 = vector.broadcast %cst_59 : f32 to vector<16x128xf32>
    %74 = arith.maximumf %72, %73 : vector<16x128xf32>
    %75 = arith.truncf %74 : vector<16x128xf32> to vector<16x128xbf16>
    %c4_60 = arith.constant 4 : index
    %c0_61 = arith.constant 0 : index
    %c0_62 = arith.constant 0 : index
    %76 = vector.load %arg4[%c4_60, %c0_61, %c0_62] : memref<5x16x128xbf16, #tpu.memory_space<vmem>>, vector<1x16x128xbf16>
    %77 = vector.shape_cast %76 : vector<1x16x128xbf16> to vector<16x128xbf16>
    %78 = vector.shape_cast %75 : vector<16x128xbf16> to vector<1x16x128xbf16>
    tpu.vector_store %arg4[%c4_60, %c0_61, %c0_62], %78 {strides = array<i32>} : memref<5x16x128xbf16, #tpu.memory_space<vmem>>, vector<1x16x128xbf16>,
    return
  }
  func.func @transform_0(%arg0: i32) -> (i32, i32, i32) {
    %c0_i32 = arith.constant 0 : i32
    %c0_i32_0 = arith.constant 0 : i32
    %c0_i32_1 = arith.constant 0 : i32
    return %c0_i32, %arg0, %c0_i32_0 : i32, i32, i32
  }
  func.func @transform_1(%arg0: i32) -> (i32, i32) {
    %c0_i32 = arith.constant 0 : i32
    %c0_i32_0 = arith.constant 0 : i32
    %c0_i32_1 = arith.constant 0 : i32
    return %c0_i32, %c0_i32_0 : i32, i32
  }
  func.func @transform_2(%arg0: i32) -> (i32, i32) {
    %c0_i32 = arith.constant 0 : i32
    %c0_i32_0 = arith.constant 0 : i32
    %c0_i32_1 = arith.constant 0 : i32
    return %c0_i32, %c0_i32_0 : i32, i32
  }
  func.func @transform_3(%arg0: i32) -> (i32, i32, i32) {
    %c0_i32 = arith.constant 0 : i32
    %c0_i32_0 = arith.constant 0 : i32
    %c0_i32_1 = arith.constant 0 : i32
    return %c0_i32, %arg0, %c0_i32_0 : i32, i32, i32
  }
}

</mosaic_0001>

<bundles_post_ra>
// kernel: tpu_custom_call.1
= control target key start
LH: loop header
LB: loop body
LE: loop exit
PB: predicated region body
PF: predicated region fallthrough
CT: control target
= control target key end

     0   :  { %8 = vsyncpa [#allocation3], 0  ;;  %s609_s0 = inlined_call_operand.hbm [shape: bf16[5,16,16], index: 0, kind: input, shape index: {}]   ;;  %s610_s1 = inlined_call_operand.hbm [shape: bf16[48,128], index: 1, kind: input, shape index: {}]   ;;  %s611_s2 = inlined_call_operand.vmem [shape: f32[1,128], index: 2, kind: input, shape index: {}]   ;;  %s612_s3 = inlined_call_operand.hbm [shape: bf16[5,16,128], index: 3, kind: output, shape index: {}]  }
   0x1   :  { %9 = vsyncpa [#allocation6], 0 }
   0x2   :  { %10 = vsyncpa [#allocation4], 0  ;;  %s15_s14 = sshll.u32 %s609_s0, 4  ;;  %s546_s15 = smov [#allocation2]   ;;  %s16_s14 = int_to_ptr.hbm [resolvable:$true] %s15_s14 }
   0x3   :  { %s17_s16 = sshll.u32 %s546_s15, 4  ;;  %s28_s19 = sshll.u32 %s610_s1, 4  ;;  %s18_s16 = int_to_ptr.vmem [resolvable:$true] %s17_s16  ;;  %s29_s19 = int_to_ptr.hbm [resolvable:$true] %s28_s19 }
   0x4   :  { %s547_s20 = smov 64   ;;  %s548_s21 = smov 4  }
   0x5   :  { %23 = dma.hbm_to_vmem [thread:$0]  %s16_s14, 640, %s18_s16, [#allocation3], %s547_s20, %s547_s20, %s548_s21  }
   0x6   :  { %s549_s22 = smov [#allocation5]  }
   0x7   :  { %s30_s23 = sshll.u32 %s549_s22, 4  ;;  %s31_s23 = int_to_ptr.vmem [resolvable:$true] %s30_s23 }
   0x8   :  { %36 = dma.hbm_to_vmem [thread:$0]  %s29_s19, 384, %s31_s23, [#allocation6], %s547_s20, %s547_s20, %s548_s21  }
   0x9   :  { %540 = dma.done.wait [#allocation3], 640  }
   0xa   :  { %541 = vsyncadd [#allocation3], 4294966656 }
   0xb   :  { %542 = dma.done.wait [#allocation6], 384  }
   0xc   :  { %543 = vsyncadd [#allocation6], 4294966912  ;;  %v428_v0 = vld [vmem:[#allocation2 + $0x10] sm:$0xff]  ;;  %v422_v1 = vld [vmem:[#allocation2] sm:$0xff]  ;;  %s550_s0 = smov 16   ;;  %s551_s1 = smov 32  }
   0xd   :  { %196 = vrot.lane.b32.xlu1 %v428_v0, %s550_s0  ;;  %65 = vrot.lane.b32.xlu0 %v422_v1, %s550_s0  ;;  %v429_v2 = vld [vmem:[#allocation2 + $0x18] sm:$0xff]  ;;  %v420_v4 = vld [vmem:[#allocation5 + $0x8] sm:$0xff]  ;;  %v423_v6 = vld [vmem:[#allocation2 + $0x8] sm:$0xff]  ;;  %vm74_vm0 = vcmask 130048   ;;  %vm78_vm1 = vcmask 261120   ;;  %vm102_vm2 = vcmask 392192  }
   0xe   :  { %v421_v3 = vld [vmem:[#allocation5 + $0x10] sm:$0xff]  ;;  %203 = vrot.lane.b32.xlu2 %v429_v2, %s551_s1  ;;  %v432_v7 = vld [vmem:[#allocation2 + $0x20] sm:$0xff]  ;;  %v425_v8 = vld [vmem:[#allocation2 + $0x8] sm:$0xff]  ;;  %s336_s29 = sshll.u32 %s612_s3, 4  ;;  %s337_s29 = int_to_ptr.hbm [resolvable:$true] %s336_s29 }
   0xf   :  { %217 = vmatpush.bf16.msra.mxu2 %v421_v3  ;;  %110 = vmatpush.bf16.msra.mxu0 %v421_v3  ;;  %v431_v5 = vld [vmem:[#allocation2 + $0x18] sm:$0xff]  ;;  %v434_v9 = vld [vmem:[#allocation2 + $0x20] sm:$0xff]  ;;  %v426_v10 = vld [vmem:[#allocation2 + $0x10] sm:$0xff] }
  0x10   :  { %271 = vmatpush.bf16.msra.mxu3 %v421_v3  ;;  %163 = vmatpush.bf16.msra.mxu1 %v421_v3  ;;  %v419_v11 = vld [vmem:[#allocation5] sm:$0xff]  ;;  %v430_v18 = vld [vmem:[#allocation2 + $0x10] sm:$0xff]  ;;  %v424_v26 = vld [vmem:[#allocation2] sm:$0xff] }
  0x11   :  { %v427_v13 = vld [vmem:[#allocation2 + $0x8] sm:$0xff]  ;;  %v433_v29 = vld [vmem:[#allocation2 + $0x18] sm:$0xff]  ;;  %v467_v37 = vld [vmem:[%s611_s2] ss:$0 sm:$0xff]  ;;  %s552_s2 = smov [#allocation7]  }
  0x12   :  { %s334_s26 = sshll.u32 %s552_s2, 4  ;;  %s335_s26 = int_to_ptr.vmem [resolvable:$true] %s334_s26 }
  0x13   :  { %218 = vmatpush.bf16.msra.mxu2 %v420_v4  ;;  %111 = vmatpush.bf16.msra.mxu0 %v420_v4 }
  0x14   :  { %272 = vmatpush.bf16.msra.mxu3 %v420_v4  ;;  %164 = vmatpush.bf16.msra.mxu1 %v420_v4 }
  0x15   :  { %250 = vrot.lane.b32.xlu1 %v431_v5, %s550_s0  ;;  %72 = vrot.lane.b32.xlu0 %v423_v6, %s551_s1 }
  0x16   :  { %257 = vrot.lane.b32.xlu2 %v432_v7, %s551_s1 }
  0x17   :  { %219 = vmatpush.bf16.msra.mxu2 %v419_v11  ;;  %112 = vmatpush.bf16.msra.mxu0 %v419_v11 }
  0x18   :  { %273 = vmatpush.bf16.msra.mxu3 %v419_v11  ;;  %165 = vmatpush.bf16.msra.mxu1 %v419_v11 }
  0x1b   :  { %314 = vmatpush.bf16.msrb.mxu0 %v421_v3 }
  0x1d   :  { %142 = vrot.lane.b32.xlu0 %v425_v8, %s550_s0  ;;  %301 = vrot.lane.b32.xlu1 %v434_v9, %s550_s0 }
  0x1e   :  { %149 = vrot.lane.b32.xlu2 %v426_v10, %s551_s1 }
  0x1f   :  { %315 = vmatpush.bf16.msrb.mxu0 %v420_v4 }
  0x23   :  { %316 = vmatpush.bf16.msrb.mxu0 %v419_v11 }
  0x68   :  { %v204_v12 = vpop.permute.xlu2 %203 }
  0x70   :  { %v258_v19 = vpop.permute.xlu2 %257 }
  0x78   :  { %v150_v27 = vpop.permute.xlu2 %149 }
  0x7f   :  { %v197_v14 = vpop.permute.xlu1 %196  ;;  %v66_v15 = vpop.permute.xlu0 %65 }
  0x80   :  { %v207_v16 = vsel %vm74_vm0, %v427_v13, %v197_v14  ;;  %v77_v20 = vsel %vm74_vm0, 0, %v66_v15 }
  0x81   :  { %v209_v17 = vsel %vm78_vm1, %v207_v16, %v204_v12 }
  0x82   :  { %396 = vmatmul.msk.bf16.vlgmr.msra.gmra.mxu2 %vm102_vm2, %v209_v17 }
  0x87   :  { %v251_v21 = vpop.permute.xlu1 %250  ;;  %v73_v22 = vpop.permute.xlu0 %72 }
  0x88   :  { %v261_v23 = vsel %vm74_vm0, %v430_v18, %v251_v21  ;;  %v80_v24 = vsel %vm78_vm1, %v77_v20, %v73_v22 }
  0x89   :  { %370 = vmatmul.msk.bf16.vlgmr.msra.gmra.mxu0 %vm102_vm2, %v80_v24  ;;  %v263_v25 = vsel %vm78_vm1, %v261_v23, %v258_v19 }
  0x8a   :  { %409 = vmatmul.msk.bf16.vlgmr.msra.gmra.mxu3 %vm102_vm2, %v263_v25 }
  0x8f   :  { %v143_v28 = vpop.permute.xlu0 %142  ;;  %v302_v31 = vpop.permute.xlu1 %301 }
  0x90   :  { %v153_v30 = vsel %vm74_vm0, %v424_v26, %v143_v28  ;;  %v305_v33 = vsel %vm74_vm0, %v433_v29, %v302_v31 }
  0x91   :  { %v155_v32 = vsel %vm78_vm1, %v153_v30, %v150_v27  ;;  %v306_v34 = vsel %vm78_vm1, %v305_v33, 0 }
  0x92   :  { %383 = vmatmul.msk.bf16.vlgmr.msra.gmra.mxu1 %vm102_vm2, %v155_v32 }
  0x99   :  { %418 = vmatmul.msk.bf16.vlgmr.msrb.gmra.mxu0 %vm102_vm2, %v306_v34 }
 0x105   :  { %v221_v35 = vpop.f32.mrf.mxu2 }
 0x106   :  { %v114_v36 = vpop.f32.mrf.mxu0  ;;  %v222_v38 = vadd.f32 %v467_v37, %v221_v35 }
 0x107   :  { %v115_v39 = vadd.f32 %v467_v37, %v114_v36 }
 0x108   :  { %v226_v42 = vmax.f32 %v222_v38, 0.0 }
 0x109   :  { %v119_v48 = vmax.f32 %v115_v39, 0.0 }
 0x10d   :  { %v223_v40 = vpop.f32.mrf.mxu2  ;;  %v275_v41 = vpop.f32.mrf.mxu3 }
 0x10e   :  { %v224_v43 = vadd.f32 %v467_v37, %v223_v40  ;;  %v116_v44 = vpop.f32.mrf.mxu0  ;;  %v276_v51 = vadd.f32 %v467_v37, %v275_v41 }
 0x10f   :  { %v117_v45 = vadd.f32 %v467_v37, %v116_v44  ;;  %v167_v46 = vpop.f32.mrf.mxu1 }
 0x110   :  { %v227_v47 = vmax.f32 %v224_v43, 0.0  ;;  %v168_v53 = vadd.f32 %v467_v37, %v167_v46  ;;  %v280_v55 = vmax.f32 %v276_v51, 0.0 }
 0x111   :  { %v120_v49 = vmax.f32 %v117_v45, 0.0 }
 0x112   :  { %v448_v50 = vpack.c.bf16 %v227_v47, %v226_v42  ;;  %v172_v59 = vmax.f32 %v168_v53, 0.0 }
 0x113   :  { %v438_v52 = vpack.c.bf16 %v120_v49, %v119_v48 }
 0x114   :  { %449 = vst [vmem:[#allocation7 + $0x10] sm:$0xff] %v448_v50  }
 0x115   :  { %439 = vst [vmem:[#allocation7] sm:$0xff] %v438_v52   ;;  %v277_v54 = vpop.f32.mrf.mxu3 }
 0x116   :  { %v278_v56 = vadd.f32 %v467_v37, %v277_v54  ;;  %v318_v57 = vpop.f32.mrf.mxu0 }
 0x117   :  { %v169_v58 = vpop.f32.mrf.mxu1  ;;  %v319_v1 = vadd.f32 %v467_v37, %v318_v57 }
 0x118   :  { %v281_v60 = vmax.f32 %v278_v56, 0.0  ;;  %v170_v61 = vadd.f32 %v467_v37, %v169_v58 }
 0x119   :  { %v323_v4 = vmax.f32 %v319_v1, 0.0 }
 0x11a   :  { %v453_v62 = vpack.c.bf16 %v281_v60, %v280_v55  ;;  %v173_v63 = vmax.f32 %v170_v61, 0.0 }
 0x11c   :  { %454 = vst [vmem:[#allocation7 + $0x18] sm:$0xff] %v453_v62   ;;  %v443_v0 = vpack.c.bf16 %v173_v63, %v172_v59 }
 0x11e   :  { %444 = vst [vmem:[#allocation7 + $0x8] sm:$0xff] %v443_v0   ;;  %v320_v2 = vpop.f32.mrf.mxu0 }
 0x11f   :  { %v321_v3 = vadd.f32 %v467_v37, %v320_v2 }
 0x121   :  { %v324_v5 = vmax.f32 %v321_v3, 0.0 }
 0x123   :  { %v458_v6 = vpack.c.bf16 %v324_v5, %v323_v4 }
 0x125   :  { %459 = vst [vmem:[#allocation7 + $0x20] sm:$0xff] %v458_v6  }
 0x126   :  { %342 = dma.vmem_to_hbm [thread:$0]  %s335_s26, 640, %s337_s29, [#allocation4], %s547_s20, %s547_s20, %s548_s21  }
 0x127   :  { %544 = dma.done.wait [#allocation4], 640  }
 0x128   :  { %545 = vsyncadd [#allocation4], 4294966656 }
 0x129   :  { %347 = vsyncpa [#allocation3], 1 }
 0x12a   :  { %348 = vsyncpa [#allocation6], 1 }
 0x12b   :  { %349 = vsyncpa [#allocation4], 1 }

</bundles_post_ra>
